<compile_context>
chip_gen: v7x
topology: tpu7x:2x2x1
jax: 0.10.0
libtpu: 0.0.40
codegen_flags: <defaults>
</compile_context>

<pallas_src>
import functools

import numpy as np
import jax
import jax.numpy as jnp
from jax.experimental import pallas as pl
from jax.experimental.pallas import tpu as pltpu


# ----------------------------------------------------------------------------
# Helpers inferred from asa.py ("round to a power of two").
# TODO(synk): get_r2 / round_r2 were not provided in asa.py; assuming r2 is the set of
#             powers of two and rounding is round-up-to-power-of-2.  Candidates are
#             restricted to divisors of M so the (B, M//L, L, 3L) reshape is always legal.
# ----------------------------------------------------------------------------
def _pow2_divisor_candidates(M):
    cands = []
    p = 2
    while p <= max(M // 4, 2) and M % p == 0:
        cands.append(p)
        p *= 2
    return cands or [1]


def compute_L(span, M):
    """Mirror of AutoSelectAttention.get_maximum_direction.

    L defines static output shapes, so one scalar device->host transfer is unavoidable
    when it is data-dependent; pass L= to auto_select_attention to amortize/skip it."""
    stat = jnp.max(jnp.abs(span[:, :, 0]) + jnp.abs(span[:, :, 1]))   # device-side reduction
    stat = float(jax.device_get(stat))                                # 4-byte transfer + sync
    L_raw = int(np.ceil(stat)) + 1
    if L_raw > M // 4:
        L_raw = M // 4
    cands = _pow2_divisor_candidates(M)
    for c in cands:
        if c >= L_raw:
            return c
    return cands[-1]


# ----------------------------------------------------------------------------
# Tiling selection: largest legal row tile whose double-buffered blocks fit the budget.
# ----------------------------------------------------------------------------
def _divisors(n):
    ds, i = set(), 1
    while i * i <= n:
        if n % i == 0:
            ds.add(i)
            ds.add(n // i)
        i += 1
    return ds


def _ceil_to(x, m):
    return -(-x // m) * m


def _choose_row_tile(M, L3, out_itemsize, vmem_budget_bytes):
    """R_T = largest divisor of M (multiple of 8, or == M) such that
    2 x output block (1, R_T, 3L) + 2 x span block (1, R_T, 2) fit the VMEM budget."""
    lanes_out = _ceil_to(L3, 128)          # VMEM lane padding of the output tile
    lanes_in = 128                         # span tile (R_T, 2) pads its lane dim to 128

    def vmem_need(rt):
        sub = _ceil_to(rt, 8)
        out_buf = sub * lanes_out * out_itemsize
        in_buf = sub * lanes_in * 4
        return 2 * out_buf + 2 * in_buf    # double-buffered in and out

    cands = sorted({d for d in _divisors(M) if d % 8 == 0} | {M}, reverse=True)
    for rt in cands:
        if vmem_need(rt) <= vmem_budget_bytes:
            return rt, vmem_need(rt)
    rt = min(cands)                        # nothing fits the budget: smallest legal block
    return rt, vmem_need(rt)


# ----------------------------------------------------------------------------
# Pallas kernel: element-wise hot path on a (1, R_T, 3L) row-flat output block.
# ----------------------------------------------------------------------------
def asa_kernel(span_ref, o_ref, *, L, R_T, L_is_pow2):
    # span_ref: (1, R_T, 2) f32 ; o_ref: (1, R_T, 3L).  Global row m = s*L + i.
    sp = span_ref[...]
    mean = sp[:, :, 0:1]                                    # (1, R_T, 1)
    var = sp[:, :, 1:2]                                     # (1, R_T, 1)

    # Hoisted per-row work: one reciprocal per row; negate folded into the scale.
    inv = 1.0 / (var + 1e-5)
    ninv2 = -(inv * inv)                                    # (1, R_T, 1)

    # i = (global row) mod L as a per-row column (L is a power of two by construction).
    r0 = pl.program_id(1) * R_T
    m = r0 + jax.lax.broadcasted_iota(jnp.int32, (1, R_T, 1), dimension=1)
    i = (m & (L - 1)) if L_is_pow2 else (m % L)
    off = mean - i.astype(jnp.float32) - float(L)           # (1, R_T, 1)

    # Big tensor: add, mul, mul (3 VPU ops / element), then one contiguous store.
    j = jax.lax.broadcasted_iota(jnp.int32, (1, 1, 3 * L), dimension=2).astype(jnp.float32)
    d = j + off                                             # (1, R_T, 3L)
    o_ref[...] = ((d * d) * ninv2).astype(o_ref.dtype)


def auto_select_attention(span, M, *, L=None, out_dtype=jnp.float32,
                          vmem_budget_bytes=44 << 20):
    """span: (B, M, 2) float -> (out (B, M//L, L, 3L) out_dtype, L).

    out_dtype=jnp.bfloat16 halves writeback bytes (~2x wall time on this store-bound
    kernel) if the downstream consumer tolerates it; float32 matches the PyTorch module.
    Pass L= (cached from a previous step, or the static worst case M//4) to skip the one
    scalar device->host sync in compute_L."""
    B = span.shape[0]
    assert span.shape == (B, M, 2), span.shape
    span = span.astype(jnp.float32)

    if L is None:
        L = compute_L(span, M)
    L = int(L)
    assert M % L == 0, (M, L)
    S = M // L
    L3 = 3 * L

    R_T, vmem_need = _choose_row_tile(M, L3, jnp.dtype(out_dtype).itemsize, vmem_budget_bytes)
    grid = (B, M // R_T)

    out_flat = pl.pallas_call(
        functools.partial(asa_kernel, L=L, R_T=R_T, L_is_pow2=(L & (L - 1)) == 0),
        out_shape=jax.ShapeDtypeStruct((B, M, L3), out_dtype),
        grid=grid,
        in_specs=[pl.BlockSpec((1, R_T, 2), lambda b, r: (b, r, 0))],
        out_specs=pl.BlockSpec((1, R_T, L3), lambda b, r: (b, r, 0)),
        compiler_params=pltpu.CompilerParams(
            # Both grid axes are fully independent -> megacore sharding where available.
            # TODO(synk): on v7x, verify in the trace that the grid is split across both
            #             TensorCores; if not, mark an axis CORE_PARALLEL or use core_map.
            dimension_semantics=("parallel", "parallel"),
            vmem_limit_bytes=int(vmem_need + (8 << 20)),    # honest need + slack
        ),
    )(span)

    # Free (contiguous-dims) reshape back to the module's output shape.
    return out_flat.reshape(B, S, L, L3), L


# ----------------------------------------------------------------------------
# Pure-JAX reference that follows the PyTorch skew path literally.
# ----------------------------------------------------------------------------
def reference_forward(span, L):
    B, M, _ = span.shape
    mean = span[:, :, 0:1]
    var = span[:, :, 1:2]
    x_full = (jnp.arange(M) - M // 2).astype(jnp.float32)
    x = x_full[M // 2 - 2 * L: M // 2 + 2 * L]             # (4L,)
    y = -((x + mean) / (var + 1e-5)) ** 2                  # (B, M, 4L)
    S = M // L
    y = y.reshape(B, S, -1)
    y = y[:, :, 1:y.shape[2] - L + 1]
    y = y.reshape(B, S, L, -1)
    y = y[:, :, :, L - 1:]
    return y


if __name__ == "__main__":
    key = jax.random.PRNGKey(0)
    B, M = 2, 16
    span = jax.random.normal(key, (B, M, 2), dtype=jnp.float32)

    out, L = auto_select_attention(span, M)
    out = jax.block_until_ready(out)
    assert out.shape == (B, M // L, L, 3 * L), out.shape

    ref = reference_forward(span, L)
    # Slightly relaxed tolerance: the kernel uses a hoisted reciprocal and the folded
    # -(inv*inv) scale instead of a per-element divide (differs by a couple of ulp).
    np.testing.assert_allclose(np.asarray(out), np.asarray(ref), rtol=1e-5, atol=1e-6)

    print("KERNEL_OK")
</pallas_src>

<mosaic_0001>
module attributes {stable_mosaic.version = 11 : i64} {
  func.func @asa_kernel(%arg0: i32, %arg1: i32, %arg2: memref<1x16x2xf32, #tpu.memory_space<vmem>>, %arg3: memref<1x16x12xf32, #tpu.memory_space<vmem>>) attributes {dimension_semantics = [#tpu.dimension_semantics<parallel>, #tpu.dimension_semantics<parallel>], iteration_bounds = array<i64: 2, 1>, scalar_prefetch = 0 : i64, scratch_operands = 0 : i64, tpu.core_type = #tpu.core_type<tc>, window_params = [{transform_indices = @transform_0, window_bounds = array<i64: 1, 16, 2>}, {transform_indices = @transform_1, window_bounds = array<i64: 1, 16, 12>}]} {
    %c0 = arith.constant 0 : index
    %c0_0 = arith.constant 0 : index
    %c0_1 = arith.constant 0 : index
    %0 = vector.load %arg2[%c0, %c0_0, %c0_1] : memref<1x16x2xf32, #tpu.memory_space<vmem>>, vector<1x16x2xf32>
    %1 = vector.extract_strided_slice %0 {offsets = [0, 0, 0], sizes = [1, 16, 1], strides = [1, 1, 1]} : vector<1x16x2xf32> to vector<1x16x1xf32>
    %2 = vector.extract_strided_slice %0 {offsets = [0, 0, 1], sizes = [1, 16, 1], strides = [1, 1, 1]} : vector<1x16x2xf32> to vector<1x16x1xf32>
    %cst = arith.constant 9.99999974E-6 : f32
    %3 = vector.broadcast %cst : f32 to vector<1x16x1xf32>
    %4 = arith.addf %2, %3 : vector<1x16x1xf32>
    %cst_2 = arith.constant 1.000000e+00 : f32
    %5 = vector.broadcast %cst_2 : f32 to vector<1x16x1xf32>
    %6 = arith.divf %5, %4 : vector<1x16x1xf32>
    %7 = arith.mulf %6, %6 : vector<1x16x1xf32>
    %cst_3 = arith.constant 0.000000e+00 : f32
    %8 = vector.broadcast %cst_3 : f32 to vector<1x16x1xf32>
    %9 = arith.subf %8, %7 : vector<1x16x1xf32>
    %c16_i32 = arith.constant 16 : i32
    %10 = arith.muli %arg1, %c16_i32 : i32
    %11 = tpu.iota {dimensions = array<i32: 1>} : vector<1x16x1xi32>
    %12 = vector.broadcast %10 : i32 to vector<1x16x1xi32>
    %13 = arith.addi %12, %11 : vector<1x16x1xi32>
    %c3_i32 = arith.constant 3 : i32
    %14 = vector.broadcast %c3_i32 : i32 to vector<1x16x1xi32>
    %15 = arith.andi %13, %14 : vector<1x16x1xi32>
    %16 = arith.sitofp %15 : vector<1x16x1xi32> to vector<1x16x1xf32>
    %17 = arith.subf %1, %16 : vector<1x16x1xf32>
    %cst_4 = arith.constant 4.000000e+00 : f32
    %18 = vector.broadcast %cst_4 : f32 to vector<1x16x1xf32>
    %19 = arith.subf %17, %18 : vector<1x16x1xf32>
    %20 = tpu.iota {dimensions = array<i32: 2>} : vector<1x1x12xi32>
    %21 = arith.sitofp %20 : vector<1x1x12xi32> to vector<1x1x12xf32>
    %22 = vector.broadcast %21 : vector<1x1x12xf32> to vector<1x16x12xf32>
    %23 = vector.broadcast %19 : vector<1x16x1xf32> to vector<1x16x12xf32>
    %24 = arith.addf %22, %23 : vector<1x16x12xf32>
    %25 = arith.mulf %24, %24 : vector<1x16x12xf32>
    %26 = vector.broadcast %9 : vector<1x16x1xf32> to vector<1x16x12xf32>
    %27 = arith.mulf %25, %26 : vector<1x16x12xf32>
    %c0_5 = arith.constant 0 : index
    %c0_6 = arith.constant 0 : index
    %c0_7 = arith.constant 0 : index
    %28 = vector.load %arg3[%c0_5, %c0_6, %c0_7] : memref<1x16x12xf32, #tpu.memory_space<vmem>>, vector<1x16x12xf32>
    tpu.vector_store %arg3[%c0_5, %c0_6, %c0_7], %27 {strides = array<i32>} : memref<1x16x12xf32, #tpu.memory_space<vmem>>, vector<1x16x12xf32>,
    return
  }
  func.func @transform_0(%arg0: i32, %arg1: i32) -> (i32, i32, i32) {
    %c0_i32 = arith.constant 0 : i32
    %c0_i32_0 = arith.constant 0 : i32
    return %arg0, %arg1, %c0_i32 : i32, i32, i32
  }
  func.func @transform_1(%arg0: i32, %arg1: i32) -> (i32, i32, i32) {
    %c0_i32 = arith.constant 0 : i32
    %c0_i32_0 = arith.constant 0 : i32
    return %arg0, %arg1, %c0_i32 : i32, i32, i32
  }
}

</mosaic_0001>

<bundles_post_ra>
// kernel: tpu_custom_call.1
= control target key start
LH: loop header
LB: loop body
LE: loop exit
PB: predicated region body
PF: predicated region fallthrough
CT: control target
= control target key end

     0   :  { %s386_s6 = smov 0   ;;  %s388_s7 = smov 0   ;;  %s426_s0 = inlined_call_operand.vmem [shape: f32[2,16,2], index: 0, kind: input, shape index: {}]   ;;  %s427_s1 = inlined_call_operand.vmem [shape: f32[2,16,12], index: 1, kind: output, shape index: {}]  }
   0x1   :  { %s390_s8 = smov 0  }
   0x2 LB: > { %s23_s9 = sadd.s32 1, %s368_s7  ;;  %p306_p0 = scmp.ge.s32.totalorder %s372_s8, 1  ;;  %s372_s8 = sphi %s390_s8, %s11_s8   ;;  %s368_s7 = sphi %s388_s7, %s429_s7   ;;  %s364_s6 = sphi %s386_s6, %s428_s6  }
   0x3   : > { %p25_p1 = scmp.ge.s32.totalorder %s23_s9, 2  ;;  %p108_p2 = scmp.lt.s32.totalorder %s372_s8, 3 }
   0x5   : > { %s431_s9 = smov (%p25_p1, %s23_s9), 0  ;;  %p109_p3 = pnand %p306_p0, %p108_p2 }
   0x6   : > { %p137_p4 = scmp.lt.s32.totalorder (!%p109_p3), %s364_s6, 1  ;;  %v169_v0 = vlaneseq (!%p109_p3)  ;;  %v374_v1 = vmov (!%p109_p3), 0   ;;  %v375_v2 = vmov (!%p109_p3), 1   ;;  %vm212_vm0 = vcmask (!%p109_p3), 97280  }
   0x7   : > { %112 = sbr.rel (%p109_p3) target bundleno = 171 (0xab), region = 24  ;;  %343 = vset.pattern.permute.xlu0 (!%p109_p3), %v374_v1  ;;  %344 = vset.pattern.permute.xlu1 (!%p109_p3), %v375_v2 }
   0x8   : > { %v170_v3 = vshrl.u32 (!%p109_p3), %v169_v0, 7  ;;  %v184_v23 = vand.u32 (!%p109_p3), 127, %v169_v0 }
   0xa   : > { %v175_v4 = vand.u32 (!%p109_p3), 3, %v170_v3  ;;  %v171_v5 = vadd.s32 (!%p109_p3), 8, %v170_v3  ;;  %v185_v24 = vcvt.s32.f32 (!%p109_p3), %v184_v23 }
   0xc   : > { %v177_v8 = vcvt.s32.f32 (!%p109_p3), %v175_v4  ;;  %v176_v9 = vand.u32 (!%p109_p3), 3, %v171_v5 }
   0xe   : > { %s433_s6 = smov (!%p137_p4, %s364_s6), 1  ;;  %v178_v13 = vcvt.s32.f32 %v176_v9 }
   0xf   : > { %s315_s10 = sshll.u32 %s433_s6, 4 }
  0x10   : > { %s144_s13 = scalar_lea.vmem %s426_s0, %s315_s10  ;;  %s154_s16 = scalar_lea.vmem %s427_s1, %s315_s10 }
  0x11   : > { %v156_v6 = vld [vmem:[%s144_s13] sm:$0xff]  ;;  %v157_v7 = vld [vmem:[%s144_s13 + $0x8] sm:$0xff] }
  0x12   : > { %v159_v10 = vadd.f32 1e-05, %v157_v7  ;;  %v158_v11 = vadd.f32 1e-05, %v156_v6  ;;  %v179_v12 = vsub.f32 %v156_v6, %v177_v8  ;;  %v180_v15 = vsub.f32 %v157_v7, %v178_v13 }
  0x14   : > { %346 = vrcp.f32 %v159_v10  ;;  %v311_v14 = vadd.f32 -4.0, %v179_v12  ;;  %v312_v16 = vadd.f32 -4.0, %v180_v15 }
  0x15   : > { %348 = vrcp.f32 %v158_v11 }
  0x16   : > { %188 = vperm.xlu0 %343, %v311_v14  }
  0x1a   : > { %193 = vperm.xlu0 %343, %v312_v16  }
  0x1e   : > { %v347_v17 = vpop.eup %346  ;;  %345 = vset.pattern.permute.xlu0 %v375_v2 }
  0x1f   : > { %v349_v18 = vpop.eup %348  ;;  %v165_v20 = vmul.f32 %v347_v17, %v347_v17 }
  0x20   : > { %v164_v19 = vmul.f32 %v349_v18, %v349_v18 }
  0x21   : > { %v167_v22 = vsub.f32 0.0, %v165_v20 }
  0x22   : > { %v166_v21 = vsub.f32 0.0, %v164_v19 }
  0x24   : > { %202 = vperm.xlu1 %344, %v166_v21  }
  0x28   : > { %207 = vperm.xlu1 %344, %v167_v22  }
  0x95   : > { %v189_v25 = vpop.permute.xlu0 %188 }
  0x96   : > { %v196_v26 = vadd.f32 %v189_v25, %v185_v24 }
  0x98   : > { %v198_v28 = vmul.f32 %v196_v26, %v196_v26 }
  0x99   : > { %v194_v27 = vpop.permute.xlu0 %193 }
  0x9a   : > { %v197_v29 = vadd.f32 %v194_v27, %v185_v24 }
  0x9c   : > { %v199_v32 = vmul.f32 %v197_v29, %v197_v29 }
  0xa3   : > { %v203_v30 = vpop.permute.xlu1 %202 }
  0xa4   : > { %v210_v31 = vmul.f32 %v203_v30, %v198_v28 }
  0xa6   : > { %213 = vst.msk [vmem:[%s154_s16] sm:$0xff] %vm212_vm0, %v210_v31 }
  0xa7   : > { %v208_v33 = vpop.permute.xlu1 %207 }
  0xa8   : > { %v211_v34 = vmul.f32 %v208_v33, %v199_v32 }
  0xaa   : > { %214 = vst.msk [vmem:[%s154_s16 + $0x8] sm:$0xff] %vm212_vm0, %v211_v34 }
  0xab PF: > { %s11_s8 = sadd.s32 1, %s372_s8   ;;  %s428_s6 = smov %s368_s7 }
  0xac   : > { %p8_p5 = scmp.ge.s32.totalorder %s11_s8, 4   ;;  %s429_s7 = smov %s431_s9 }
  0xae   :  { %10 = sbr.rel (!%p8_p5) target bundleno = 2 (0x2), region = 54 }

</bundles_post_ra>
